<compile_context>
chip_gen: v5e
topology: v5e:2x2
jax: 0.10.0
libtpu: 0.0.40
codegen_flags: <defaults>
</compile_context>

<pallas_src>
import jax
import jax.numpy as jnp
from jax import lax
from jax.experimental import pallas as pl
from jax.experimental.pallas import tpu as pltpu

IN_FEATURES = 10
OUT_FEATURES = 10
K_PAD = 16     # contraction dim padded to a sublane-friendly size (zeros are exact)
N_PAD = 128    # output/lane dim padded to a full 128-lane vreg width (dense stores)
MAX_TILE_B = 512  # batch tile if B ever grows (fits easily in 64 MiB v7x VMEM)


def linear_relu_kernel(x_ref, w_ref, b_ref, o_ref):
    # x_ref: [TILE_B, K_PAD]   (zero-padded activations)
    # w_ref: [N_PAD,  K_PAD]   (PyTorch [out, in] layout, zero-padded — no transpose HLO)
    # b_ref: [1, N_PAD]
    # o_ref: [TILE_B, N_PAD]   (lane-dense output tile)
    y = lax.dot_general(
        x_ref[...], w_ref[...],
        dimension_numbers=(((1,), (1,)), ((), ())),   # contract K of x with K of W
        preferred_element_type=jnp.float32,
    )
    y = y + b_ref[...]                       # bias broadcast over rows (f32 epilogue)
    o_ref[...] = jnp.maximum(y, 0.0).astype(o_ref.dtype)


def prepare_params(weight, bias):
    """One-time parameter prep, outside the per-call hot path.

    Zero-pads the PyTorch-convention weight [OUT, IN] and bias [OUT] to
    lane/sublane-aligned shapes without transposing anything."""
    w_pad = (jnp.zeros((N_PAD, K_PAD), jnp.float32)
             .at[:OUT_FEATURES, :IN_FEATURES].set(weight.astype(jnp.float32)))
    b_pad = (jnp.zeros((1, N_PAD), jnp.float32)
             .at[0, :OUT_FEATURES].set(bias.astype(jnp.float32)))
    return w_pad, b_pad


def dummy_model_forward(x, w_pad, b_pad):
    """x: [B, IN_FEATURES] f32; w_pad/b_pad: outputs of prepare_params."""
    B = x.shape[0]

    # Batch tiling: single block for small B, 512-row tiles once B grows.
    b_aligned = max(8, ((B + 7) // 8) * 8)
    tile_b = min(b_aligned, MAX_TILE_B)
    B_pad = ((B + tile_b - 1) // tile_b) * tile_b

    # Explicit zero-pad of the activations (rows beyond B and lanes beyond K=10).
    x_pad = (jnp.zeros((B_pad, K_PAD), jnp.float32)
             .at[:B, :IN_FEATURES].set(x.astype(jnp.float32)))

    grid = (B_pad // tile_b,)

    # Advisory cost hint — this kernel is launch/latency-bound at tiny shapes;
    # the estimate keeps XLA's scheduler honest about it.
    cost = pl.CostEstimate(
        flops=2 * B_pad * K_PAD * N_PAD,
        transcendentals=0,
        bytes_accessed=4 * (x_pad.size + w_pad.size + b_pad.size + B_pad * N_PAD),
    )

    out_pad = pl.pallas_call(
        linear_relu_kernel,
        out_shape=jax.ShapeDtypeStruct((B_pad, N_PAD), jnp.float32),
        grid_spec=pltpu.PrefetchScalarGridSpec(
            num_scalar_prefetch=0,
            grid=grid,
            in_specs=[
                pl.BlockSpec((tile_b, K_PAD), lambda i: (i, 0)),   # activations tiled on batch
                pl.BlockSpec((N_PAD, K_PAD), lambda i: (0, 0)),    # weight resident
                pl.BlockSpec((1, N_PAD), lambda i: (0, 0)),        # bias resident
            ],
            out_specs=pl.BlockSpec((tile_b, N_PAD), lambda i: (i, 0)),
        ),
        compiler_params=pltpu.CompilerParams(
            dimension_semantics=("parallel",),   # lets v7x shard batch tiles across its 2 TCs
        ),
        cost_estimate=cost,
    )(x_pad, w_pad, b_pad)

    # Slice back to the logical [B, OUT_FEATURES] result.
    return out_pad[:B, :OUT_FEATURES]


if __name__ == "__main__":
    key = jax.random.PRNGKey(0)
    k_x, k_w, k_b = jax.random.split(key, 3)

    batch = 8
    # Deterministic parameter init mimicking nn.Linear's U(-1/sqrt(in), 1/sqrt(in))
    bound = 1.0 / (IN_FEATURES ** 0.5)
    weight = jax.random.uniform(k_w, (OUT_FEATURES, IN_FEATURES),
                                minval=-bound, maxval=bound, dtype=jnp.float32)
    bias = jax.random.uniform(k_b, (OUT_FEATURES,),
                              minval=-bound, maxval=bound, dtype=jnp.float32)
    x = jax.random.normal(k_x, (batch, IN_FEATURES), dtype=jnp.float32)

    # One-time param prep (padding), then the per-call forward.
    w_pad, b_pad = prepare_params(weight, bias)
    out = dummy_model_forward(x, w_pad, b_pad)
    jax.block_until_ready(out)

    # Cross-check against plain JAX reference.
    ref = jnp.maximum(x @ weight.T + bias, 0.0)
    assert out.shape == (batch, OUT_FEATURES)
    assert jnp.allclose(out, ref, atol=1e-5, rtol=1e-5)

    print("KERNEL_OK")
</pallas_src>

<mosaic_0001>
module attributes {stable_mosaic.version = 11 : i64} {
  func.func @linear_relu_kernel(%arg0: i32, %arg1: memref<8x16xf32, #tpu.memory_space<vmem>>, %arg2: memref<128x16xf32, #tpu.memory_space<vmem>>, %arg3: memref<1x128xf32, #tpu.memory_space<vmem>>, %arg4: memref<8x128xf32, #tpu.memory_space<vmem>>) attributes {dimension_semantics = [#tpu.dimension_semantics<parallel>], iteration_bounds = array<i64: 1>, scalar_prefetch = 0 : i64, scratch_operands = 0 : i64, tpu.core_type = #tpu.core_type<tc>, window_params = [{transform_indices = @transform_0, window_bounds = array<i64: 8, 16>}, {pipeline_mode = #tpu.pipeline_mode<synchronous>, transform_indices = @transform_1, window_bounds = array<i64: 128, 16>}, {pipeline_mode = #tpu.pipeline_mode<synchronous>, transform_indices = @transform_2, window_bounds = array<i64: 1, 128>}, {transform_indices = @transform_3, window_bounds = array<i64: 8, 128>}]} {
    %c0 = arith.constant 0 : index
    %c0_0 = arith.constant 0 : index
    %0 = vector.load %arg1[%c0, %c0_0] : memref<8x16xf32, #tpu.memory_space<vmem>>, vector<8x16xf32>
    %c0_1 = arith.constant 0 : index
    %c0_2 = arith.constant 0 : index
    %1 = vector.load %arg2[%c0_1, %c0_2] : memref<128x16xf32, #tpu.memory_space<vmem>>, vector<128x16xf32>
    %cst = arith.constant dense<0.000000e+00> : vector<8x128xf32>
    %2 = tpu.matmul %0, %1, %cst {dimension_numbers = #tpu.dot_dimension_numbers<[1], [1], [0], [0], [0, 0, 1, 0], [], []>} : vector<8x16xf32>, vector<128x16xf32>, vector<8x128xf32> -> vector<8x128xf32>
    %c0_3 = arith.constant 0 : index
    %c0_4 = arith.constant 0 : index
    %3 = vector.load %arg3[%c0_3, %c0_4] : memref<1x128xf32, #tpu.memory_space<vmem>>, vector<1x128xf32>
    %4 = vector.broadcast %3 : vector<1x128xf32> to vector<8x128xf32>
    %5 = arith.addf %2, %4 : vector<8x128xf32>
    %cst_5 = arith.constant 0.000000e+00 : f32
    %6 = vector.broadcast %cst_5 : f32 to vector<8x128xf32>
    %7 = arith.maximumf %5, %6 : vector<8x128xf32>
    %c0_6 = arith.constant 0 : index
    %c0_7 = arith.constant 0 : index
    %8 = vector.load %arg4[%c0_6, %c0_7] : memref<8x128xf32, #tpu.memory_space<vmem>>, vector<8x128xf32>
    tpu.vector_store %arg4[%c0_6, %c0_7], %7 {strides = array<i32>} : memref<8x128xf32, #tpu.memory_space<vmem>>, vector<8x128xf32>,
    return
  }
  func.func @transform_0(%arg0: i32) -> (i32, i32) {
    %c0_i32 = arith.constant 0 : i32
    %c0_i32_0 = arith.constant 0 : i32
    return %arg0, %c0_i32 : i32, i32
  }
  func.func @transform_1(%arg0: i32) -> (i32, i32) {
    %c0_i32 = arith.constant 0 : i32
    %c0_i32_0 = arith.constant 0 : i32
    %c0_i32_1 = arith.constant 0 : i32
    return %c0_i32, %c0_i32_0 : i32, i32
  }
  func.func @transform_2(%arg0: i32) -> (i32, i32) {
    %c0_i32 = arith.constant 0 : i32
    %c0_i32_0 = arith.constant 0 : i32
    %c0_i32_1 = arith.constant 0 : i32
    return %c0_i32, %c0_i32_0 : i32, i32
  }
  func.func @transform_3(%arg0: i32) -> (i32, i32) {
    %c0_i32 = arith.constant 0 : i32
    %c0_i32_0 = arith.constant 0 : i32
    return %arg0, %c0_i32 : i32, i32
  }
}

</mosaic_0001>

<bundles_post_ra>
// kernel: tpu_custom_call.1
= control target key start
LH: loop header
LB: loop body
LE: loop exit
PB: predicated region body
PF: predicated region fallthrough
CT: control target
= control target key end

     0   :  { %vm36_vm0 = vcmask 130048   ;;  %s266_s0 = inlined_call_operand.vmem [shape: f32[8,16], index: 0, kind: input, shape index: {}]   ;;  %s267_s1 = inlined_call_operand.vmem [shape: f32[128,16], index: 1, kind: input, shape index: {}]   ;;  %s268_s2 = inlined_call_operand.vmem [shape: f32[1,128], index: 2, kind: input, shape index: {}]   ;;  %s269_s3 = inlined_call_operand.hbm [shape: f32[8,128], index: 3, kind: output, shape index: {}]  }
   0x1   :  { %v31_v0 = vld [vmem:[%s267_s1 + $0x78] sm:$0xff]  ;;  %v30_v1 = vld [vmem:[%s267_s1 + $0x70] sm:$0xff] }
   0x2   :  { %126 = vmatpush.xpose.msk.msra.mxu0 %vm36_vm0, %v31_v0 }
   0x3   :  { %8 = vsyncpa [#allocation3], 0  ;;  %v29_v2 = vld [vmem:[%s267_s1 + $0x68] sm:$0xff]  ;;  %v28_v3 = vld [vmem:[%s267_s1 + $0x60] sm:$0xff]  ;;  %s171_s21 = smov [#allocation2]   ;;  %s117_s25 = sshll.u32 %s269_s3, 4  ;;  %s118_s25 = int_to_ptr.hbm [resolvable:$true] %s117_s25 }
   0x4   :  { %v27_v4 = vld [vmem:[%s267_s1 + $0x58] sm:$0xff]  ;;  %v26_v5 = vld [vmem:[%s267_s1 + $0x50] sm:$0xff]  ;;  %v25_v6 = vld [vmem:[%s267_s1 + $0x48] sm:$0xff]  ;;  %s115_s22 = sshll.u32 %s171_s21, 4  ;;  %s116_s22 = int_to_ptr.vmem [resolvable:$true] %s115_s22 }
   0x5   :  { %v24_v7 = vld [vmem:[%s267_s1 + $0x40] sm:$0xff]  ;;  %v23_v8 = vld [vmem:[%s267_s1 + $0x38] sm:$0xff]  ;;  %v22_v9 = vld [vmem:[%s267_s1 + $0x30] sm:$0xff] }
   0x6   :  { %127 = vmatpush.xpose.msk.msra.mxu0 %vm36_vm0, %v30_v1  ;;  %v21_v10 = vld [vmem:[%s267_s1 + $0x28] sm:$0xff]  ;;  %v20_v11 = vld [vmem:[%s267_s1 + $0x20] sm:$0xff]  ;;  %v19_v12 = vld [vmem:[%s267_s1 + $0x18] sm:$0xff] }
   0x7   :  { %v18_v13 = vld [vmem:[%s267_s1 + $0x10] sm:$0xff]  ;;  %v17_v14 = vld [vmem:[%s267_s1 + $0x8] sm:$0xff]  ;;  %v16_v15 = vld [vmem:[%s267_s1] sm:$0xff] }
   0x8   :  { %v15_v16 = vld [vmem:[%s266_s0] sm:$0xff] }
   0x9   :  { %v144_v17 = vld [vmem:[%s268_s2] ss:$0 sm:$0xff] }
   0xa   :  { %128 = vmatpush.xpose.msk.msra.mxu0 %vm36_vm0, %v29_v2 }
   0xe   :  { %129 = vmatpush.xpose.msk.msra.mxu0 %vm36_vm0, %v28_v3 }
  0x12   :  { %130 = vmatpush.xpose.msk.msra.mxu0 %vm36_vm0, %v27_v4 }
  0x16   :  { %131 = vmatpush.xpose.msk.msra.mxu0 %vm36_vm0, %v26_v5 }
  0x1a   :  { %132 = vmatpush.xpose.msk.msra.mxu0 %vm36_vm0, %v25_v6 }
  0x1e   :  { %133 = vmatpush.xpose.msk.msra.mxu0 %vm36_vm0, %v24_v7 }
  0x22   :  { %134 = vmatpush.xpose.msk.msra.mxu0 %vm36_vm0, %v23_v8 }
  0x26   :  { %135 = vmatpush.xpose.msk.msra.mxu0 %vm36_vm0, %v22_v9 }
  0x2a   :  { %136 = vmatpush.xpose.msk.msra.mxu0 %vm36_vm0, %v21_v10 }
  0x2e   :  { %137 = vmatpush.xpose.msk.msra.mxu0 %vm36_vm0, %v20_v11 }
  0x32   :  { %138 = vmatpush.xpose.msk.msra.mxu0 %vm36_vm0, %v19_v12 }
  0x36   :  { %139 = vmatpush.xpose.msk.msra.mxu0 %vm36_vm0, %v18_v13 }
  0x3a   :  { %140 = vmatpush.xpose.msk.msra.mxu0 %vm36_vm0, %v17_v14 }
  0x3e   :  { %141 = vmatpush.xpose.msk.msra.mxu0 %vm36_vm0, %v16_v15 }
  0x41   :  { %142 = vmatmul.msk.f32.vlgmr.msra.gmra.mxu0 %vm36_vm0, %v15_v16 }
  0xbe   :  { %v105_v18 = vpop.f32.mrf.mxu0 }
  0xbf   :  { %v106_v19 = vadd.f32 %v144_v17, %v105_v18 }
  0xc1   :  { %v108_v20 = vmax.f32 %v106_v19, 0.0 }
  0xc3   :  { %109 = vst [vmem:[#allocation2] sm:$0xff] %v108_v20 }
  0xc4   :  { %120 = dma.vmem_to_hbm [thread:$0]  %s116_s22, 128, %s118_s25, [#allocation3]  }
  0xc5   :  { %169 = dma.done.wait [#allocation3], 128  }
  0xc6   :  { %170 = vsyncadd [#allocation3], 4294967168 }
  0xc7   :  { %125 = vsyncpa [#allocation3], 1 }

</bundles_post_ra>
